<compile_context>
chip_gen: v7x
topology: tpu7x:2x2x1
jax: 0.10.0
libtpu: 0.0.40
codegen_flags: <defaults>
</compile_context>

<pallas_src>
import functools

import jax
import jax.numpy as jnp
from jax.experimental import pallas as pl
from jax.experimental.pallas import tpu as pltpu


def _reweight_loss_kernel(out_ref, tgt_ref, t_ref, wce_ref, *, approx_recip):
    logits = out_ref[...].astype(jnp.float32)            # [TN, C]
    tgt = tgt_ref[...]                                    # [TN, 1] int32
    tn, c = logits.shape

    # Numerically stable softmax pieces (normalization cancels in beta).
    m = jnp.max(logits, axis=1, keepdims=True)            # [TN, 1]
    e = jnp.exp(logits - m)                                # un-normalized softmax
    s = jnp.sum(e, axis=1, keepdims=True)                  # [TN, 1]

    # One-hot target mask (gather == masked reduction on TPU).
    cls = jax.lax.broadcasted_iota(jnp.int32, (tn, c), 1)
    onehot = (cls == tgt).astype(jnp.float32)              # [TN, C]

    # sel_z = (logits - m)[i, y_i]; computed from logits so (logits - m) only
    # feeds exp and need not stay live.
    sel_z = jnp.sum(logits * onehot, axis=1, keepdims=True) - m
    ce = jnp.log(s) - sel_z                                 # CE = log(s) - z[y]
    pro1 = jnp.exp(sel_z)                                    # e[i, y_i]

    # (e @ T)[i, y_i] -- the 1/s softmax normalization cancels in beta.
    T = t_ref[...]
    eT = jnp.dot(e.astype(T.dtype), T, preferred_element_type=jnp.float32)
    pro2 = jnp.sum(eT * onehot, axis=1, keepdims=True)       # [TN, 1]

    # Per-row beta * CE. Rows of the ragged last tile (if any) fall outside
    # the [N, 1] output and are discarded by the clamped writeback.
    wce_ref[...] = pro1 * ce * pl.reciprocal(pro2, approx=approx_recip)


def _vmem_capacity_bytes():
    try:
        info = pltpu.get_tpu_info()
        cap = getattr(info, "vmem_capacity_bytes", None)
        if cap:
            return int(cap)
    except Exception:
        pass
    return 64 * 1024 * 1024  # conservative default (v7x per-core VMEM)


def _choose_tile_n(n, c_lanes, in_itemsize):
    # Generation-aware budget (~1/5 of VMEM): ~25 MiB on v5e/v6e (128 MiB),
    # ~12 MiB on v7x (64 MiB). Budget covers the double-buffered logits stream
    # plus ~5 f32 [TILE_N, C] in-kernel temporaries (z/e/onehot/eT/...).
    budget = max(8 << 20, _vmem_capacity_bytes() // 5)
    per_row = c_lanes * (2 * in_itemsize + 5 * 4)
    t = int(min(2048, budget // max(1, per_row)))
    t = max(8, (t // 8) * 8)
    return min(t, ((n + 7) // 8) * 8)


def reweight_loss(out, T, target, *, tile_n=None, matmul_dtype=None,
                  approx_recip=True):
    """out: [N, C] float (bf16 recommended on v5e), T: [C, C], target: [N] int.

    Returns a shape-[1] f32 loss matching the PyTorch module.
    """
    N, C = out.shape
    in_item = jnp.dtype(out.dtype).itemsize
    c_lanes = ((C + 127) // 128) * 128  # lane-padded width, for VMEM sizing only

    # bf16 MXU operands only matter once the e@T matmul is non-trivial.
    if matmul_dtype is None:
        matmul_dtype = jnp.bfloat16 if C >= 512 else jnp.float32
    T_in = T.astype(matmul_dtype)
    t_item = jnp.dtype(matmul_dtype).itemsize

    if tile_n is None:
        tile_n = _choose_tile_n(N, c_lanes, in_item)
    TILE_N = max(8, (int(tile_n) // 8) * 8)
    TILE_N = min(TILE_N, ((N + 7) // 8) * 8)
    grid = (pl.cdiv(N, TILE_N),)

    tgt2d = target.astype(jnp.int32).reshape(N, 1)

    # VMEM estimate: double-buffered logits stream + ~5 f32 [TILE_N, C_lanes]
    # intermediates + (double-buffered) resident T + lane-padded narrow
    # target/output buffers + slack.
    vmem_est = (TILE_N * c_lanes * (2 * in_item + 5 * 4)
                + 2 * c_lanes * c_lanes * t_item
                + 4 * TILE_N * 128 * 4
                + (2 << 20))
    cap = _vmem_capacity_bytes()
    vmem_limit = int(min(max(vmem_est, 16 << 20), cap - (8 << 20)))

    wce = pl.pallas_call(
        functools.partial(_reweight_loss_kernel, approx_recip=approx_recip),
        out_shape=jax.ShapeDtypeStruct((N, 1), jnp.float32),
        grid=grid,
        in_specs=[
            pl.BlockSpec((TILE_N, C), lambda i: (i, 0)),   # streamed logits
            pl.BlockSpec((TILE_N, 1), lambda i: (i, 0)),   # targets
            pl.BlockSpec((C, C), lambda i: (0, 0)),        # T (VMEM resident)
        ],
        out_specs=pl.BlockSpec((TILE_N, 1), lambda i: (i, 0)),  # per-row beta*CE
        compiler_params=pltpu.CompilerParams(
            dimension_semantics=("parallel",),   # tiles independent -> megacore
            vmem_limit_bytes=vmem_limit),
    )(out, tgt2d, T_in)

    # Tiny XLA epilogue: mean over the N per-row values (pairwise reduce).
    return (jnp.sum(wce) / jnp.float32(N)).reshape(1)


def _reference(out, T, target):
    logits = out.astype(jnp.float32)
    sm = jax.nn.softmax(logits, axis=1)
    lsm = jax.nn.log_softmax(logits, axis=1)
    idx = jnp.arange(out.shape[0])
    pro1 = sm[idx, target]
    pro2 = (sm @ T.astype(jnp.float32))[idx, target]
    ce = -lsm[idx, target]
    return jnp.mean((pro1 / pro2) * ce).reshape(1)


if __name__ == "__main__":
    key = jax.random.PRNGKey(0)
    C = 32
    eps = 0.2
    # Deterministic row-stochastic transition matrix: (1-eps)*I + eps/C.
    T = (1.0 - eps) * jnp.eye(C, dtype=jnp.float32) + eps / C

    k1, k2, k3, k4, k5, k6 = jax.random.split(key, 6)

    # Case 1: small batch, single tile.
    N1 = 8
    out1 = jax.random.normal(k1, (N1, C), dtype=jnp.float32)
    tgt1 = jax.random.randint(k2, (N1,), 0, C, dtype=jnp.int32)
    loss1 = jax.block_until_ready(reweight_loss(out1, T, tgt1))
    ref1 = _reference(out1, T, tgt1)
    assert jnp.allclose(loss1, ref1, atol=5e-3, rtol=5e-3), (loss1, ref1)

    # Case 2: N not a multiple of the tile -> multi-step "parallel" grid with a
    # ragged last tile (rows beyond N read garbage, writes are clamped away).
    N2 = 20
    out2 = jax.random.normal(k3, (N2, C), dtype=jnp.float32)
    tgt2 = jax.random.randint(k4, (N2,), 0, C, dtype=jnp.int32)
    loss2 = jax.block_until_ready(reweight_loss(out2, T, tgt2, tile_n=8))
    ref2 = _reference(out2, T, tgt2)
    assert jnp.allclose(loss2, ref2, atol=5e-3, rtol=5e-3), (loss2, ref2)

    # Case 3: bf16 logits streaming (half HBM traffic; recommended on v5e) plus
    # bf16 MXU operands for the e@T matmul. Looser tolerance for bf16 rounding.
    N3 = 200
    out3 = jax.random.normal(k5, (N3, C), dtype=jnp.float32).astype(jnp.bfloat16)
    tgt3 = jax.random.randint(k6, (N3,), 0, C, dtype=jnp.int32)
    loss3 = jax.block_until_ready(
        reweight_loss(out3, T, tgt3, matmul_dtype=jnp.bfloat16))
    ref3 = _reference(out3, T, tgt3)
    assert jnp.allclose(loss3, ref3, atol=2e-2, rtol=2e-2), (loss3, ref3)

    print("KERNEL_OK")
</pallas_src>

<mosaic_0001>
module attributes {stable_mosaic.version = 11 : i64} {
  func.func @_reweight_loss_kernel(%arg0: i32, %arg1: memref<8x32xf32, #tpu.memory_space<vmem>>, %arg2: memref<8x1xi32, #tpu.memory_space<vmem>>, %arg3: memref<32x32xf32, #tpu.memory_space<vmem>>, %arg4: memref<8x1xf32, #tpu.memory_space<vmem>>) attributes {dimension_semantics = [#tpu.dimension_semantics<parallel>], iteration_bounds = array<i64: 1>, scalar_prefetch = 0 : i64, scratch_operands = 0 : i64, tpu.core_type = #tpu.core_type<tc>, window_params = [{transform_indices = @transform_0, window_bounds = array<i64: 8, 32>}, {transform_indices = @transform_1, window_bounds = array<i64: 8, 1>}, {pipeline_mode = #tpu.pipeline_mode<synchronous>, transform_indices = @transform_2, window_bounds = array<i64: 32, 32>}, {transform_indices = @transform_3, window_bounds = array<i64: 8, 1>}]} {
    %c0 = arith.constant 0 : index
    %c0_0 = arith.constant 0 : index
    %0 = vector.load %arg1[%c0, %c0_0] : memref<8x32xf32, #tpu.memory_space<vmem>>, vector<8x32xf32>
    %c0_1 = arith.constant 0 : index
    %c0_2 = arith.constant 0 : index
    %1 = vector.load %arg2[%c0_1, %c0_2] : memref<8x1xi32, #tpu.memory_space<vmem>>, vector<8x1xi32>
    %cst = arith.constant dense<0xFF800000> : vector<8xf32>
    %2 = vector.multi_reduction <maximumf>, %0, %cst [1] : vector<8x32xf32> to vector<8xf32>
    %3 = vector.shape_cast %2 : vector<8xf32> to vector<8x1xf32>
    %4 = vector.broadcast %3 : vector<8x1xf32> to vector<8x32xf32>
    %5 = arith.subf %0, %4 : vector<8x32xf32>
    %6 = math.exp %5 : vector<8x32xf32>
    %cst_3 = arith.constant dense<0.000000e+00> : vector<8xf32>
    %7 = vector.multi_reduction <add>, %6, %cst_3 [1] : vector<8x32xf32> to vector<8xf32>
    %8 = vector.shape_cast %7 : vector<8xf32> to vector<8x1xf32>
    %9 = tpu.iota {dimensions = array<i32: 1>} : vector<8x32xi32>
    %10 = vector.broadcast %1 : vector<8x1xi32> to vector<8x32xi32>
    %11 = arith.cmpi eq, %9, %10 : vector<8x32xi32>
    %12 = arith.extui %11 : vector<8x32xi1> to vector<8x32xi32>
    %13 = arith.sitofp %12 : vector<8x32xi32> to vector<8x32xf32>
    %14 = arith.mulf %0, %13 : vector<8x32xf32>
    %cst_4 = arith.constant dense<0.000000e+00> : vector<8xf32>
    %15 = vector.multi_reduction <add>, %14, %cst_4 [1] : vector<8x32xf32> to vector<8xf32>
    %16 = vector.shape_cast %15 : vector<8xf32> to vector<8x1xf32>
    %17 = arith.subf %16, %3 : vector<8x1xf32>
    %18 = math.log %8 : vector<8x1xf32>
    %19 = arith.subf %18, %17 : vector<8x1xf32>
    %20 = math.exp %17 : vector<8x1xf32>
    %c0_5 = arith.constant 0 : index
    %c0_6 = arith.constant 0 : index
    %21 = vector.load %arg3[%c0_5, %c0_6] : memref<32x32xf32, #tpu.memory_space<vmem>>, vector<32x32xf32>
    %cst_7 = arith.constant dense<0.000000e+00> : vector<8x32xf32>
    %22 = tpu.matmul %6, %21, %cst_7 {dimension_numbers = #tpu.dot_dimension_numbers<[1], [0], [0], [1], [0, 0, 1, 1], [], []>} : vector<8x32xf32>, vector<32x32xf32>, vector<8x32xf32> -> vector<8x32xf32>
    %23 = arith.mulf %22, %13 : vector<8x32xf32>
    %cst_8 = arith.constant dense<0.000000e+00> : vector<8xf32>
    %24 = vector.multi_reduction <add>, %23, %cst_8 [1] : vector<8x32xf32> to vector<8xf32>
    %25 = vector.shape_cast %24 : vector<8xf32> to vector<8x1xf32>
    %26 = arith.mulf %20, %19 : vector<8x1xf32>
    %27 = tpu.reciprocal %25 {approx = true} : vector<8x1xf32> -> vector<8x1xf32>
    %28 = arith.mulf %26, %27 : vector<8x1xf32>
    %c0_9 = arith.constant 0 : index
    %c0_10 = arith.constant 0 : index
    %29 = vector.load %arg4[%c0_9, %c0_10] : memref<8x1xf32, #tpu.memory_space<vmem>>, vector<8x1xf32>
    tpu.vector_store %arg4[%c0_9, %c0_10], %28 {strides = array<i32>} : memref<8x1xf32, #tpu.memory_space<vmem>>, vector<8x1xf32>,
    return
  }
  func.func @transform_0(%arg0: i32) -> (i32, i32) {
    %c0_i32 = arith.constant 0 : i32
    %c0_i32_0 = arith.constant 0 : i32
    return %arg0, %c0_i32 : i32, i32
  }
  func.func @transform_1(%arg0: i32) -> (i32, i32) {
    %c0_i32 = arith.constant 0 : i32
    %c0_i32_0 = arith.constant 0 : i32
    return %arg0, %c0_i32 : i32, i32
  }
  func.func @transform_2(%arg0: i32) -> (i32, i32) {
    %c0_i32 = arith.constant 0 : i32
    %c0_i32_0 = arith.constant 0 : i32
    %c0_i32_1 = arith.constant 0 : i32
    return %c0_i32, %c0_i32_0 : i32, i32
  }
  func.func @transform_3(%arg0: i32) -> (i32, i32) {
    %c0_i32 = arith.constant 0 : i32
    %c0_i32_0 = arith.constant 0 : i32
    return %arg0, %c0_i32 : i32, i32
  }
}

</mosaic_0001>

<bundles_post_ra>
// kernel: tpu_custom_call.1
= control target key start
LH: loop header
LB: loop body
LE: loop exit
PB: predicated region body
PF: predicated region fallthrough
CT: control target
= control target key end

     0   :  { %8 = vsyncpa [#allocation3], 0  ;;  %s213_s12 = smov [#allocation2]   ;;  %s266_s0 = inlined_call_operand.vmem [shape: f32[8,32], index: 0, kind: input, shape index: {}]   ;;  %s267_s1 = inlined_call_operand.vmem [shape: s32[8,1], index: 1, kind: input, shape index: {}]   ;;  %s268_s2 = inlined_call_operand.hbm [shape: f32[32,32], index: 2, kind: input, shape index: {}]   ;;  %s269_s3 = inlined_call_operand.vmem [shape: f32[8,1], index: 3, kind: output, shape index: {}]  }
   0x1   :  { %s18_s13 = sshll.u32 %s213_s12, 4  ;;  %s189_s16 = scalar_lea.hbm %s268_s2, 512  ;;  %s19_s13 = int_to_ptr.vmem [resolvable:$true] %s18_s13 }
   0x2   :  { %p190_p0 = scmp.ne.s32.totalorder %s268_s2, %s189_s16  ;;  %p193_p1 = scmp.lt.u32.totalorder %s189_s16, %s268_s2 }
   0x4   :  { %p195_p2 = pnand %p193_p1, %p190_p0 }
   0x6   :  { %198 = shalt.err (!%p195_p2)
}
   0x7   :  { %s199_s21 = scalar_lea.vmem %s19_s13, 512  ;;  %p204_p4 = scmp.lt.s32.totalorder %s19_s13, %s19_s13 }
   0x8   :  { %p200_p3 = scmp.ne.s32.totalorder %s19_s13, %s199_s21  ;;  %p205_p5 = scmp.lt.s32.totalorder %s199_s21, %s199_s21 }
   0xa   :  { %p206_p6 = por %p205_p5, %p204_p4 }
   0xc   :  { %p207_p7 = pnand %p206_p6, %p200_p3 }
   0xe   :  { %210 = shalt.err (!%p207_p7)
}
   0xf   :  { %s214_s22 = smov 128   ;;  %s215_s23 = smov 8  }
  0x10   :  { %24 = dma.hbm_to_vmem [thread:$0]  %s268_s2, 512, %s19_s13, [#allocation3], %s214_s22, %s214_s22, %s215_s23  }
  0x11   :  { %211 = dma.done.wait [#allocation3], 512  }
  0x12   :  { %212 = vsyncadd [#allocation3], 4294966784  ;;  %v216_v0 = vmov 0   ;;  %vm30_vm0 = vcmask 261120   ;;  %v28_v1 = vld [vmem:[%s266_s0] sm:$0xff]  ;;  %v59_v4 = vld [vmem:[#allocation2 + $0x8] sm:$0xff]  ;;  %v40_v14 = vlaneseq }
  0x13   :  { %180 = vset.pattern.permute.xlu0 %v216_v0  ;;  %v31_v2 = vsel %vm30_vm0, %v28_v1, -inf  ;;  %v58_v3 = vld [vmem:[#allocation2] sm:$0xff]  ;;  %v60_v5 = vld [vmem:[#allocation2 + $0x10] sm:$0xff]  ;;  %v217_v7 = vmov 0.0|0.0   ;;  %v61_v9 = vld [vmem:[#allocation2 + $0x18] sm:$0xff]  ;;  %vm218_vm1 = vmmov 0  }
  0x14   :  { %32 = vmax.xlane.f32.xlu0 %v31_v2  ;;  %v29_v6 = vld [vmem:[%s267_s1] sm:$0xff]  ;;  %167 = vmatprep.subr.bf16.mxu0 %v217_v7  ;;  %v168_v8 = vpack.c.bf16 %v59_v4, %v58_v3  ;;  %v219_v10 = vmov 0.0   ;;  %v171_v11 = vpack.c.bf16 %v61_v9, %v60_v5  ;;  %v41_v16 = vand.u32 127, %v40_v14 }
  0x15   :  { %164 = vmatprep.mubr.msk.f32.mxu0 %vm218_vm1, %v219_v10  ;;  %vm142_vm3 = vcmask 7168  }
  0x16   :  { %169 = vmatpush3.bf16.msra.mxu0 %v168_v8 }
  0x17   :  { %170 = vmatprep.subr.bf16.mxu0 %v217_v7 }
  0x1a   :  { %172 = vmatpush3.bf16.msra.mxu0 %v171_v11 }
  0x2a   :  { %43 = vperm.xlu0 %180, %v29_v6  }
  0xa1   :  { %v33_v12 = vpop.xlane.xlu0 %32 }
  0xa2   :  { %v34_v13 = vsub.f32 %v28_v1, %v33_v12 }
  0xa4   :  { %v35_v15 = vmul.f32 1.442695, %v34_v13 }
  0xa6   :  { %181 = vpow2.f32 %v35_v15 }
  0xa9   :  { %v44_v17 = vpop.permute.xlu0 %43 }
  0xaa   :  { %vm45_vm2 = vcmp.eq.s32.totalorder %v41_v16, %v44_v17 }
  0xab   :  { %v149_v18 = vsel %vm45_vm2, 1.0, %v219_v10 }
  0xac   :  { %v48_v19 = vmul.f32 %v149_v18, %v28_v1 }
  0xae   :  { %v49_v22 = vsel %vm30_vm0, %v48_v19, 0.0 }
  0xb0   :  { %v182_v20 = vpop.eup %181 }
  0xb1   :  { %165 = vmatmul.mubr.msk.f32.vlgmr.msra.gmra.mrb[0].mxu0 %vm30_vm0, %v182_v20  ;;  %v37_v21 = vsel %vm30_vm0, %v182_v20, 0.0 }
  0xb2   :  { %38 = vadd.xlane.f32.xlu1 %v37_v21 }
  0xb6   :  { %50 = vadd.xlane.f32.xlu1 %v49_v22 }
 0x13f   :  { %v39_v27 = vpop.xlane.xlu1 %38 }
 0x140   :  { %183 = vlog2.f32 %v39_v27 }
 0x143   :  { %v51_v28 = vpop.xlane.xlu1 %50 }
 0x144   :  { %v52_v29 = vsub.f32 %v51_v28, %v33_v12 }
 0x146   :  { %v56_v30 = vmul.f32 1.442695, %v52_v29 }
 0x148   :  { %185 = vpow2.f32 %v56_v30 }
 0x14a   :  { %v184_v32 = vpop.eup %183 }
 0x14b   :  { %v54_v33 = vmul.f32 0.6931472, %v184_v32 }
 0x14d   :  { %v55_v35 = vsub.f32 %v54_v33, %v52_v29 }
 0x152   :  { %v186_v34 = vpop.eup %185 }
 0x153   :  { %v139_v36 = vmul.f32 %v186_v34, %v55_v35 }
 0x184   :  { %v131_v23 = vpop.f32.mrb[0].mxu0 }
 0x185   :  { %v135_v24 = vmul.f32 %v149_v18, %v131_v23  ;;  %v166_v25 = vpop.f32.mrb[1].mxu0 }
 0x187   :  { %v136_v26 = vsel %vm30_vm0, %v135_v24, 0.0 }
 0x188   :  { %137 = vadd.xlane.f32.xlu1 %v136_v26 }
 0x215   :  { %v138_v31 = vpop.xlane.xlu1 %137 }
 0x216   :  { %187 = vrcp.f32 %v138_v31 }
 0x220   :  { %v188_v37 = vpop.eup %187 }
 0x221   :  { %v141_v38 = vmul.f32 %v188_v37, %v139_v36 }
 0x223   :  { %143 = vst.msk [vmem:[%s269_s3] sm:$0xff] %vm142_vm3, %v141_v38 }
 0x224   :  { %148 = vsyncpa [#allocation3], 1 }

</bundles_post_ra>
